<compile_context>
chip_gen: v7x
topology: tpu7x:2x2x1
jax: 0.10.0
libtpu: 0.0.40
codegen_flags: <defaults>
</compile_context>

<pallas_src>
import jax
import jax.numpy as jnp
from jax.experimental import pallas as pl
from jax.experimental.pallas import tpu as pltpu

N_HIDDEN = 10
FC1_OUT = 20
FC2_OUT = 2

# Sublane-padded (multiple-of-8) feature dims -> full (8,128)-tile HBM writebacks.
H_PAD = 16
FC2_PAD = 8

CELL_GAIN = 0.8          # input gain of the analog DFR node (folded into the mask)
CELL_FEEDBACK = 0.5      # delayed-feedback strength
CELL_Q_LEVELS = 128.0    # 8-bit ADC quantization of the reservoir state
CELL_INV_Q = 1.0 / CELL_Q_LEVELS   # exact power of two -> single VALU multiply

MAX_BATCH_TILE = 2048    # lanes per grid step (~1 MiB working set, double-buffered)


def _round_up(n, m):
    return ((n + m - 1) // m) * m


def padded_batch(B):
    """Lane-padded batch extent used by the persistent feature-major layout."""
    return _round_up(max(int(B), 1), 128)


def _batch_tile(bp):
    """Largest multiple-of-128 divisor of bp that is <= MAX_BATCH_TILE and, when the
    batch allows it, keeps the grid length >= 2 (so v7x's two TCs both get work)."""
    assert bp % 128 == 0
    limit = min(MAX_BATCH_TILE, bp if bp <= 128 else bp // 2)
    tb = 128
    for cand in range(128, limit + 1, 128):
        if bp % cand == 0:
            tb = cand
    return tb


def _fixed_point_quantize(w, frac_bits=8):
    scale = 2.0 ** frac_bits
    return jnp.round(w * scale) / scale


def _qdfr_kernel(x_ref, prev_ref, mask_ref, w1_ref, b1_ref, w2_ref, b2_ref,
                 out_ref, cell_ref):
    # Feature-major layout: (features, batch_tile); batch is the 128-lane axis.
    x = x_ref[...]          # (H_PAD, TB) f32
    prev = prev_ref[...]    # (H_PAD, TB) f32

    # ---- AQDFRCell: analog node + delayed feedback + ADC quantization ----
    # gain is pre-folded into the mask (mask_ref = CELL_GAIN * mask, zero-padded rows).
    pre = x * mask_ref[...] + CELL_FEEDBACK * prev
    cell = jnp.tanh(pre)                                            # EUP slot
    cell = jnp.clip(jnp.round(cell * CELL_Q_LEVELS) * CELL_INV_Q, -1.0, 1.0)
    cell_ref[...] = cell                                            # full-tile store

    # ---- FixedQLinear (H -> 20): bf16 MXU operands, f32 accumulation.
    # Quantized cell (multiples of 1/128) and fixed-point w1 are exact in bf16.
    h = jnp.dot(w1_ref[...], cell.astype(jnp.bfloat16),
                preferred_element_type=jnp.float32)                 # (20, TB)
    h = jnp.maximum(h + b1_ref[...], 0.0)                           # bias + ReLU (VPU)

    # ---- fc2 (20 -> 2, zero-padded to 8 rows): second MXU dot.  Avoids the
    # (2, 20, TB) broadcast temporary (vreg spill at large TB); MXU is otherwise idle.
    out_ref[...] = (jnp.dot(w2_ref[...], h, preferred_element_type=jnp.float32)
                    + b2_ref[...])                                  # full-tile store


def _qdfr_forward_fm(x_fm, prev_fm, mask_g, w1_p, b1_p, w2_p, b2_p):
    """Feature-major fast path.

    x_fm / prev_fm: (H_PAD, bp) f32, bp a multiple of 128 (see padded_batch()).
    Returns (out_fm (FC2_PAD, bp), cell_fm (H_PAD, bp)).  Feed cell_fm back as the
    next call's prev_fm; for a fully in-place recurrent update jit the caller with
    donate_argnums on prev_fm (the pallas_call already aliases prev -> cell_out).
    """
    hp, bp = x_fm.shape
    assert hp == H_PAD and bp % 128 == 0
    tb = _batch_tile(bp)
    grid = (bp // tb,)

    batched = lambda i: (0, i)
    const = lambda i: (0, 0)

    cost = pl.CostEstimate(
        flops=int(2 * FC1_OUT * H_PAD * bp + 2 * FC2_PAD * FC1_OUT * bp
                  + 8 * H_PAD * bp),
        transcendentals=int(H_PAD * bp),
        bytes_accessed=int(4 * bp * (3 * H_PAD + FC2_PAD)
                           + 2 * FC1_OUT * H_PAD
                           + 4 * (FC1_OUT + FC2_PAD * FC1_OUT + FC2_PAD + H_PAD)),
    )

    return pl.pallas_call(
        _qdfr_kernel,
        out_shape=(jax.ShapeDtypeStruct((FC2_PAD, bp), jnp.float32),   # output
                   jax.ShapeDtypeStruct((H_PAD, bp), jnp.float32)),    # cell_out
        grid_spec=pltpu.PrefetchScalarGridSpec(
            num_scalar_prefetch=0,
            grid=grid,
            in_specs=[
                pl.BlockSpec((H_PAD, tb), batched),          # x
                pl.BlockSpec((H_PAD, tb), batched),          # prev_out (aliased)
                pl.BlockSpec((H_PAD, 1), const),             # gain*mask (VMEM-resident)
                pl.BlockSpec((FC1_OUT, H_PAD), const),       # w1 (bf16, VMEM-resident)
                pl.BlockSpec((FC1_OUT, 1), const),           # b1
                pl.BlockSpec((FC2_PAD, FC1_OUT), const),     # w2
                pl.BlockSpec((FC2_PAD, 1), const),           # b2
            ],
            out_specs=(
                pl.BlockSpec((FC2_PAD, tb), batched),        # output
                pl.BlockSpec((H_PAD, tb), batched),          # cell_out
            ),
        ),
        # Recurrent state updated in place: prev_fm buffer becomes cell_fm.
        input_output_aliases={1: 1},
        compiler_params=pltpu.CompilerParams(
            dimension_semantics=("parallel",)),
        cost_estimate=cost,
    )(x_fm, prev_fm, mask_g, w1_p, b1_p, w2_p, b2_p)


qdfr_forward_fm = jax.jit(_qdfr_forward_fm)


def prepare_params(mask, w1, b1, w2, b2):
    """One-time parameter prep (outside the hot loop): FixedQLinear fixed-point
    quantization, CELL_GAIN folded into the mask, sublane padding, bf16 MXU weight."""
    w1_q = _fixed_point_quantize(w1)
    b1_q = _fixed_point_quantize(b1)
    mask_g = jnp.zeros((H_PAD, 1), jnp.float32).at[:N_HIDDEN, 0].set(
        CELL_GAIN * mask.astype(jnp.float32))
    w1_p = jnp.zeros((FC1_OUT, H_PAD), jnp.bfloat16).at[:, :N_HIDDEN].set(
        w1_q.astype(jnp.bfloat16))
    b1_p = b1_q.astype(jnp.float32).reshape(FC1_OUT, 1)
    w2_p = jnp.zeros((FC2_PAD, FC1_OUT), jnp.float32).at[:FC2_OUT].set(
        w2.astype(jnp.float32))
    b2_p = jnp.zeros((FC2_PAD, 1), jnp.float32).at[:FC2_OUT, 0].set(
        b2.astype(jnp.float32))
    return mask_g, w1_p, b1_p, w2_p, b2_p


def to_feature_major(a, bp, rows):
    """Batch-major (B, F) -> zero-padded feature-major (rows, bp)."""
    B, F = a.shape
    out = jnp.zeros((rows, bp), jnp.float32)
    return out.at[:F, :B].set(a.T.astype(jnp.float32))


def qdfr_forward(x, prev_out, params):
    """Batch-major (PyTorch-layout) convenience wrapper.  For the recurrent hot loop,
    call qdfr_forward_fm directly with persistent feature-major state instead."""
    B = x.shape[0]
    bp = padded_batch(B)
    x_fm = to_feature_major(x, bp, H_PAD)
    prev_fm = to_feature_major(prev_out, bp, H_PAD)
    out_fm, cell_fm = qdfr_forward_fm(x_fm, prev_fm, *params)
    return out_fm[:FC2_OUT, :B].T, cell_fm[:N_HIDDEN, :B].T


if __name__ == "__main__":
    key = jax.random.PRNGKey(0)
    k_x, k_prev, k_mask, k_w1, k_b1, k_w2, k_b2 = jax.random.split(key, 7)

    B = 200  # not a multiple of 128 -> exercises lane padding and a 2-step batch grid

    x = jax.random.normal(k_x, (B, N_HIDDEN), dtype=jnp.float32)
    prev_out = jax.random.normal(k_prev, (B, N_HIDDEN), dtype=jnp.float32)

    # AQDFRCell fixed binary input mask (+1 / -1)
    mask = jnp.where(jax.random.uniform(k_mask, (N_HIDDEN,)) > 0.5, 1.0, -1.0)
    mask = mask.astype(jnp.float32)

    # FixedQLinear(n_hidden, 20) params, PyTorch (out, in) layout
    w1 = 0.1 * jax.random.normal(k_w1, (FC1_OUT, N_HIDDEN), dtype=jnp.float32)
    b1 = 0.1 * jax.random.normal(k_b1, (FC1_OUT,), dtype=jnp.float32)
    # nn.Linear(20, 2, bias=True)
    w2 = 0.1 * jax.random.normal(k_w2, (FC2_OUT, FC1_OUT), dtype=jnp.float32)
    b2 = 0.1 * jax.random.normal(k_b2, (FC2_OUT,), dtype=jnp.float32)

    params = prepare_params(mask, w1, b1, w2, b2)

    # ---- step 1 through the batch-major (PyTorch-interface) wrapper ----
    output, cell_out = qdfr_forward(x, prev_out, params)
    jax.block_until_ready((output, cell_out))
    assert output.shape == (B, FC2_OUT)
    assert cell_out.shape == (B, N_HIDDEN)

    # Pure-JAX reference (same assumed FixedQLinear / AQDFRCell semantics).
    w1_q = _fixed_point_quantize(w1)
    b1_q = _fixed_point_quantize(b1)

    def ref_step(x_in, prev_in):
        pre = CELL_GAIN * x_in * mask[None, :] + CELL_FEEDBACK * prev_in
        cell = jnp.clip(jnp.round(jnp.tanh(pre) * CELL_Q_LEVELS) / CELL_Q_LEVELS,
                        -1.0, 1.0)
        h = jnp.maximum(cell @ w1_q.T + b1_q, 0.0)
        return h @ w2.T + b2, cell

    out_ref1, cell_ref1 = ref_step(x, prev_out)
    cell_err = float(jnp.max(jnp.abs(cell_out - cell_ref1)))
    out_err = float(jnp.max(jnp.abs(output - out_ref1)))
    assert cell_err <= 1.0 / CELL_Q_LEVELS + 1e-4, cell_err
    assert out_err <= 5e-2, out_err

    # ---- two recurrent steps via the persistent feature-major state path ----
    bp = padded_batch(B)
    x_fm = to_feature_major(x, bp, H_PAD)
    state = to_feature_major(prev_out, bp, H_PAD)
    out_fm, state = qdfr_forward_fm(x_fm, state, *params)
    out_fm, state = qdfr_forward_fm(x_fm, state, *params)   # cell_fm fed straight back
    jax.block_until_ready((out_fm, state))

    out_ref2, cell_ref2 = ref_step(x, cell_ref1)
    cell2_err = float(jnp.max(jnp.abs(state[:N_HIDDEN, :B].T - cell_ref2)))
    out2_err = float(jnp.max(jnp.abs(out_fm[:FC2_OUT, :B].T - out_ref2)))
    assert cell2_err <= 2.0 / CELL_Q_LEVELS + 1e-4, cell2_err
    assert out2_err <= 5e-2, out2_err

    print("KERNEL_OK")
</pallas_src>

<mosaic_0001>
module attributes {stable_mosaic.version = 11 : i64} {
  func.func @_qdfr_kernel(%arg0: i32, %arg1: memref<16x128xf32, #tpu.memory_space<vmem>>, %arg2: memref<16x128xf32, #tpu.memory_space<vmem>>, %arg3: memref<16x1xf32, #tpu.memory_space<vmem>>, %arg4: memref<20x16xbf16, #tpu.memory_space<vmem>>, %arg5: memref<20x1xf32, #tpu.memory_space<vmem>>, %arg6: memref<8x20xf32, #tpu.memory_space<vmem>>, %arg7: memref<8x1xf32, #tpu.memory_space<vmem>>, %arg8: memref<8x128xf32, #tpu.memory_space<vmem>>, %arg9: memref<16x128xf32, #tpu.memory_space<vmem>>) attributes {dimension_semantics = [#tpu.dimension_semantics<parallel>], iteration_bounds = array<i64: 2>, scalar_prefetch = 0 : i64, scratch_operands = 0 : i64, tpu.core_type = #tpu.core_type<tc>, window_params = [{transform_indices = @transform_0, window_bounds = array<i64: 16, 128>}, {transform_indices = @transform_1, window_bounds = array<i64: 16, 128>}, {pipeline_mode = #tpu.pipeline_mode<synchronous>, transform_indices = @transform_2, window_bounds = array<i64: 16, 1>}, {pipeline_mode = #tpu.pipeline_mode<synchronous>, transform_indices = @transform_3, window_bounds = array<i64: 20, 16>}, {pipeline_mode = #tpu.pipeline_mode<synchronous>, transform_indices = @transform_4, window_bounds = array<i64: 20, 1>}, {pipeline_mode = #tpu.pipeline_mode<synchronous>, transform_indices = @transform_5, window_bounds = array<i64: 8, 20>}, {pipeline_mode = #tpu.pipeline_mode<synchronous>, transform_indices = @transform_6, window_bounds = array<i64: 8, 1>}, {transform_indices = @transform_7, window_bounds = array<i64: 8, 128>}, {transform_indices = @transform_8, window_bounds = array<i64: 16, 128>}]} {
    %c0 = arith.constant 0 : index
    %c0_0 = arith.constant 0 : index
    %0 = vector.load %arg1[%c0, %c0_0] : memref<16x128xf32, #tpu.memory_space<vmem>>, vector<16x128xf32>
    %c0_1 = arith.constant 0 : index
    %c0_2 = arith.constant 0 : index
    %1 = vector.load %arg2[%c0_1, %c0_2] : memref<16x128xf32, #tpu.memory_space<vmem>>, vector<16x128xf32>
    %c0_3 = arith.constant 0 : index
    %c0_4 = arith.constant 0 : index
    %2 = vector.load %arg3[%c0_3, %c0_4] : memref<16x1xf32, #tpu.memory_space<vmem>>, vector<16x1xf32>
    %3 = vector.broadcast %2 : vector<16x1xf32> to vector<16x128xf32>
    %4 = arith.mulf %0, %3 : vector<16x128xf32>
    %cst = arith.constant 5.000000e-01 : f32
    %5 = vector.broadcast %cst : f32 to vector<16x128xf32>
    %6 = arith.mulf %5, %1 : vector<16x128xf32>
    %7 = arith.addf %4, %6 : vector<16x128xf32>
    %8 = math.tanh %7 : vector<16x128xf32>
    %cst_5 = arith.constant 1.280000e+02 : f32
    %9 = vector.broadcast %cst_5 : f32 to vector<16x128xf32>
    %10 = arith.mulf %8, %9 : vector<16x128xf32>
    %11 = math.roundeven %10 : vector<16x128xf32>
    %cst_6 = arith.constant 7.812500e-03 : f32
    %12 = vector.broadcast %cst_6 : f32 to vector<16x128xf32>
    %13 = arith.mulf %11, %12 : vector<16x128xf32>
    %cst_7 = arith.constant -1.000000e+00 : f32
    %cst_8 = arith.constant 1.000000e+00 : f32
    %14 = vector.broadcast %cst_7 : f32 to vector<16x128xf32>
    %15 = arith.maximumf %14, %13 : vector<16x128xf32>
    %16 = vector.broadcast %cst_8 : f32 to vector<16x128xf32>
    %17 = arith.minimumf %16, %15 : vector<16x128xf32>
    %c0_9 = arith.constant 0 : index
    %c0_10 = arith.constant 0 : index
    %18 = vector.load %arg9[%c0_9, %c0_10] : memref<16x128xf32, #tpu.memory_space<vmem>>, vector<16x128xf32>
    tpu.vector_store %arg9[%c0_9, %c0_10], %17 {strides = array<i32>} : memref<16x128xf32, #tpu.memory_space<vmem>>, vector<16x128xf32>,
    %c0_11 = arith.constant 0 : index
    %c0_12 = arith.constant 0 : index
    %19 = vector.load %arg4[%c0_11, %c0_12] : memref<20x16xbf16, #tpu.memory_space<vmem>>, vector<20x16xbf16>
    %20 = arith.truncf %17 : vector<16x128xf32> to vector<16x128xbf16>
    %cst_13 = arith.constant dense<0.000000e+00> : vector<20x128xf32>
    %21 = tpu.matmul %19, %20, %cst_13 {dimension_numbers = #tpu.dot_dimension_numbers<[1], [0], [0], [1], [0, 0, 1, 1], [], []>} : vector<20x16xbf16>, vector<16x128xbf16>, vector<20x128xf32> -> vector<20x128xf32>
    %c0_14 = arith.constant 0 : index
    %c0_15 = arith.constant 0 : index
    %22 = vector.load %arg5[%c0_14, %c0_15] : memref<20x1xf32, #tpu.memory_space<vmem>>, vector<20x1xf32>
    %23 = vector.broadcast %22 : vector<20x1xf32> to vector<20x128xf32>
    %24 = arith.addf %21, %23 : vector<20x128xf32>
    %cst_16 = arith.constant 0.000000e+00 : f32
    %25 = vector.broadcast %cst_16 : f32 to vector<20x128xf32>
    %26 = arith.maximumf %24, %25 : vector<20x128xf32>
    %c0_17 = arith.constant 0 : index
    %c0_18 = arith.constant 0 : index
    %27 = vector.load %arg6[%c0_17, %c0_18] : memref<8x20xf32, #tpu.memory_space<vmem>>, vector<8x20xf32>
    %cst_19 = arith.constant dense<0.000000e+00> : vector<8x128xf32>
    %28 = tpu.matmul %27, %26, %cst_19 {dimension_numbers = #tpu.dot_dimension_numbers<[1], [0], [0], [1], [0, 0, 1, 1], [], []>} : vector<8x20xf32>, vector<20x128xf32>, vector<8x128xf32> -> vector<8x128xf32>
    %c0_20 = arith.constant 0 : index
    %c0_21 = arith.constant 0 : index
    %29 = vector.load %arg7[%c0_20, %c0_21] : memref<8x1xf32, #tpu.memory_space<vmem>>, vector<8x1xf32>
    %30 = vector.broadcast %29 : vector<8x1xf32> to vector<8x128xf32>
    %31 = arith.addf %28, %30 : vector<8x128xf32>
    %c0_22 = arith.constant 0 : index
    %c0_23 = arith.constant 0 : index
    %32 = vector.load %arg8[%c0_22, %c0_23] : memref<8x128xf32, #tpu.memory_space<vmem>>, vector<8x128xf32>
    tpu.vector_store %arg8[%c0_22, %c0_23], %31 {strides = array<i32>} : memref<8x128xf32, #tpu.memory_space<vmem>>, vector<8x128xf32>,
    return
  }
  func.func @transform_0(%arg0: i32) -> (i32, i32) {
    %c0_i32 = arith.constant 0 : i32
    %c0_i32_0 = arith.constant 0 : i32
    return %c0_i32, %arg0 : i32, i32
  }
  func.func @transform_1(%arg0: i32) -> (i32, i32) {
    %c0_i32 = arith.constant 0 : i32
    %c0_i32_0 = arith.constant 0 : i32
    return %c0_i32, %arg0 : i32, i32
  }
  func.func @transform_2(%arg0: i32) -> (i32, i32) {
    %c0_i32 = arith.constant 0 : i32
    %c0_i32_0 = arith.constant 0 : i32
    %c0_i32_1 = arith.constant 0 : i32
    return %c0_i32, %c0_i32_0 : i32, i32
  }
  func.func @transform_3(%arg0: i32) -> (i32, i32) {
    %c0_i32 = arith.constant 0 : i32
    %c0_i32_0 = arith.constant 0 : i32
    %c0_i32_1 = arith.constant 0 : i32
    return %c0_i32, %c0_i32_0 : i32, i32
  }
  func.func @transform_4(%arg0: i32) -> (i32, i32) {
    %c0_i32 = arith.constant 0 : i32
    %c0_i32_0 = arith.constant 0 : i32
    %c0_i32_1 = arith.constant 0 : i32
    return %c0_i32, %c0_i32_0 : i32, i32
  }
  func.func @transform_5(%arg0: i32) -> (i32, i32) {
    %c0_i32 = arith.constant 0 : i32
    %c0_i32_0 = arith.constant 0 : i32
    %c0_i32_1 = arith.constant 0 : i32
    return %c0_i32, %c0_i32_0 : i32, i32
  }
  func.func @transform_6(%arg0: i32) -> (i32, i32) {
    %c0_i32 = arith.constant 0 : i32
    %c0_i32_0 = arith.constant 0 : i32
    %c0_i32_1 = arith.constant 0 : i32
    return %c0_i32, %c0_i32_0 : i32, i32
  }
  func.func @transform_7(%arg0: i32) -> (i32, i32) {
    %c0_i32 = arith.constant 0 : i32
    %c0_i32_0 = arith.constant 0 : i32
    return %c0_i32, %arg0 : i32, i32
  }
  func.func @transform_8(%arg0: i32) -> (i32, i32) {
    %c0_i32 = arith.constant 0 : i32
    %c0_i32_0 = arith.constant 0 : i32
    return %c0_i32, %arg0 : i32, i32
  }
}

</mosaic_0001>

<bundles_post_ra>
// kernel: _qdfr_forward_fm.1
= control target key start
LH: loop header
LB: loop body
LE: loop exit
PB: predicated region body
PF: predicated region fallthrough
CT: control target
= control target key end

     0   :  { %14 = vsyncpa [#allocation4], 0  ;;  %s1293_s0 = inlined_call_operand.vmem [shape: f32[16,256], index: 0, kind: input, shape index: {}]   ;;  %s1294_s1 = inlined_call_operand.hbm [shape: f32[16,256], index: 1, kind: input, shape index: {}, may-alias: {1,8}]   ;;  %s1295_s2 = inlined_call_operand.vmem [shape: f32[16,1], index: 2, kind: input, shape index: {}]   ;;  %s1296_s3 = inlined_call_operand.vmem [shape: bf16[20,16], index: 3, kind: input, shape index: {}]   ;;  %s1297_s4 = inlined_call_operand.vmem [shape: f32[20,1], index: 4, kind: input, shape index: {}]   ;;  %s1298_s5 = inlined_call_operand.vmem [shape: f32[8,20], index: 5, kind: input, shape index: {}]   ;;  %s1299_s6 = inlined_call_operand.vmem [shape: f32[8,1], index: 6, kind: input, shape index: {}]   ;;  %s1300_s7 = inlined_call_operand.hbm [shape: f32[8,256], index: 7, kind: output, shape index: {0}]   ;;  %s1301_s8 = inlined_call_operand.hbm [shape: f32[16,256], index: 8, kind: output, shape index: {1}, may-alias: {1,8}]  }
   0x1   :  { %16 = vsyncpa [#allocation4 + $0x1], 0 }
   0x2   :  { %17 = vsyncpa [#allocation5], 0 }
   0x3   :  { %19 = vsyncpa [#allocation5 + $0x1], 0 }
   0x4   :  { %20 = vsyncpa [#allocation8], 0 }
   0x5   :  { %22 = vsyncpa [#allocation8 + $0x1], 0  ;;  %s1060_s27 = smov 0   ;;  %s1062_s28 = smov 0  }
   0x6   :  { %s1064_s29 = smov 0   ;;  %s1066_s30 = smov 0  }
   0x7 LB: > { %s1081_s9 = sadd.s32 4294967295, %s1000_s30   ;;  %s757_s10 = sadd.s32 4294967294, %s1000_s30   ;;  %s1000_s30 = sphi %s1066_s30, %s1316_s30   ;;  %s996_s29 = sphi %s1064_s29, %s1315_s29   ;;  %s992_s28 = sphi %s1062_s28, %s1314_s28   ;;  %s988_s27 = sphi %s1060_s27, %s1313_s27  }
   0x8   : > { %s1085_s11 = sadd.s32 1, %s1000_s30   ;;  %s35_s12 = sadd.s32 1, %s996_s29 }
   0x9   : > { %s32_s13 = ssub.s32 %s1000_s30, %s1085_s11  ;;  %p42_p0 = scmp.ne.s32.totalorder %s996_s29, %s992_s28 }
   0xa   : > { %p33_p1 = scmp.eq.s32.totalorder %s32_s13, 0  ;;  %p43_p2 = scmp.eq.s32.totalorder %s1000_s30, 0 }
   0xb   : > { %p74_p3 = scmp.ne.s32.totalorder %s992_s28, %s988_s27  ;;  %p75_p4 = scmp.eq.s32.totalorder %s1081_s9, 0 }
   0xc   : > { %s1097_s14 = scalar_select %p33_p1, %s996_s29, %s35_s12  }
   0xd   : > { %p1099_p5 = por %p43_p2, %p42_p0  ;;  %p1103_p6 = por %p75_p4, %p74_p3 }
   0xe   : > { %1304 = sst [smem:[#allocation12_spill]] %s1097_s14  ;;  %p203_p7 = scmp.eq.s32.totalorder %s1081_s9, 1 }
   0xf   : > { %p209_p8 = scmp.eq.s32.totalorder %s757_s10, 1  ;;  %p1302_p11 = scmp.ge.s32.totalorder %s1000_s30, 2 }
  0x10   : > { %p1108_p9 = por %p203_p7, %p42_p0 }
  0x11   : > { %p1112_p10 = por %p209_p8, %p74_p3  ;;  %266 = sbr.rel (%p1302_p11) target bundleno = 58 (0x3a), region = 36 }
  0x12   : > { %s1307_s17 = scalar_select %p1108_p9, 1, 0 }
  0x13   : > { %s1308_s18 = scalar_select %p1112_p10, 1, 0 }
  0x18   : > { %269 = sbr.rel (!%p1099_p5) target bundleno = 31 (0x1f), region = 40  ;;  %s271_s19 = sand.u32 (%p1099_p5), 1, %s996_s29  }
  0x19   : > { %s761_s20 = sshll.u32 (%p1099_p5), %s1000_s30, 3  ;;  %s760_s21 = sshll.u32 (%p1099_p5), %s271_s19, 4 }
  0x1a   : > { %s275_s24 = scalar_lea.vmem (%p1099_p5), %s1293_s0, %s761_s20  ;;  %s273_s25 = scalar_lea.vmem (%p1099_p5), [#allocation2], %s760_s21 }
  0x1b   : > { %v305_v0 = vld [vmem:[%s275_s24] sm:$0xff] (%p1099_p5)  ;;  %v307_v1 = vld [vmem:[%s275_s24 + $0x10] sm:$0xff] (%p1099_p5) }
  0x1c   : > { %306 = vst [vmem:[%s273_s25] sm:$0xff] (%p1099_p5), %v305_v0  ;;  %308 = vst [vmem:[%s273_s25 + $0x8] sm:$0xff] (%p1099_p5), %v307_v1 }
  0x1f PF: > { %s315_s26 = sand.u32 1, %s996_s29   ;;  %s763_s10 = sshll.u32 %s1000_s30, 7 }
  0x20   : > { %s762_s12 = sshll.u32 %s315_s26, 4  ;;  %s1131_s19 = scalar_lea.hbm %s1294_s1, %s763_s10 }
  0x21   : > { %s319_s20 = scalar_lea.vmem [#allocation3], %s762_s12  ;;  %s1135_s22 = scalar_lea.sflag [#allocation4], %s315_s26 }
  0x22   : > { %s325_s21 = sshll.u32 %s319_s20, 4  ;;  %s874_s23 = scalar_lea.hbm %s1131_s19, 256  ;;  %s1133_s21 = int_to_ptr.vmem [resolvable:$true] %s325_s21 }
  0x23   : > { %p875_p12 = scmp.ne.s32.totalorder %s1131_s19, %s874_s23  ;;  %s878_s14 = scalar_lea.hbm %s1294_s1, 512 }
  0x24   : > { %p879_p1 = scmp.lt.u32.totalorder %s1131_s19, %s1294_s1  ;;  %p880_p2 = scmp.lt.u32.totalorder %s878_s14, %s874_s23 }
  0x25   : > { %p876_p13 = pnand %p875_p12, %p1099_p5  ;;  %p882_p4 = scmp.lt.u32.totalorder %s874_s23, %s1131_s19 }
  0x26   : > { %p881_p3 = por %p880_p2, %p879_p1 }
  0x27   : > { %p877_p0 = pneg %p876_p13 }
  0x28   : > { %p883_p7 = por %p882_p4, %p881_p3 }
  0x2a   : > { %p884_p8 = pnand %p883_p7, %p877_p0 }
  0x2c   : > { %887 = shalt.err (!%p884_p8)
}
  0x2d   : > { %s888_s26 = scalar_lea.vmem %s1133_s21, 256  ;;  %s1002_s12 = smov [#allocation3]  }
  0x2e   : > { %p889_p12 = scmp.ne.s32.totalorder %s1133_s21, %s888_s26  ;;  %s892_s20 = sshll.u32 %s1002_s12, 4  ;;  %s893_s20 = int_to_ptr.vmem [resolvable:$false] %s892_s20 }
  0x2f   : > { %s894_s24 = scalar_lea.vmem %s893_s20, 512  ;;  %p895_p10 = scmp.lt.s32.totalorder %s1133_s21, %s893_s20 }
  0x30   : > { %p890_p13 = pnand %p889_p12, %p1099_p5  ;;  %p896_p9 = scmp.lt.s32.totalorder %s894_s24, %s888_s26 }
  0x32   : > { %p891_p11 = pneg %p890_p13  ;;  %p897_p1 = por %p896_p9, %p895_p10 }
  0x34   : > { %p898_p2 = pnand %p897_p1, %p891_p11 }
  0x36   : > { %901 = shalt.err (!%p898_p2)
}
  0x37   : > { %s1003_s23 = smov 256   ;;  %s1004_s25 = smov 128  }
  0x38   : > { %s1005_s14 = smov 8  }
  0x39   : > { %810 = dma.hbm_to_vmem [thread:$0]  (%p1099_p5), %s1131_s19, 256, %s1133_s21, %s1135_s22, %s1003_s23, %s1004_s25, %s1005_s14  }
  0x3a PF: > { %p764_p0 = scmp.ge.s32.totalorder %s1000_s30, 1  ;;  %p333_p3 = scmp.lt.s32.totalorder %s1000_s30, 3 }
  0x3c   : > { %p334_p4 = pnand %p764_p0, %p333_p3 }
  0x3d   : > { %s1162_s10 = sand.u32 (!%p334_p4), 1, %s992_s28  }
  0x3e   : > { %337 = sbr.rel (%p334_p4) target bundleno = 687 (0x2af), region = 82  ;;  %s1165_s13 = sshll.u32 (!%p334_p4), %s1162_s10, 4 }
  0x3f   : > { %s342_s26 = scalar_lea.vmem (!%p334_p4), [#allocation2], %s1165_s13  ;;  %s347_s15 = scalar_lea.sflag (!%p334_p4), [#allocation4], %s1162_s10 }
  0x40   : > { %s350_s19 = scalar_lea.vmem (!%p334_p4), [#allocation3], %s1165_s13 }
  0x45   : > { %975 = dma.done.wait (%p1103_p6), %s347_s15, 256  }
  0x46   : > { %977 = vsyncadd (%p1103_p6), %s347_s15, 4294967040  ;;  %v1006_v2 = vmov 0   ;;  %v397_v3 = vld [vmem:[%s1295_s2] sm:$0xff]  ;;  %v398_v4 = vld [vmem:[%s1295_s2 + $0x8] sm:$0xff]  ;;  %vm459_vm0 = vcmask 130048   ;;  %v1007_v34 = vmov 0.0|0.0  }
  0x47   : > { %866 = vset.pattern.permute.xlu0 %v1006_v2  ;;  %867 = vset.pattern.permute.xlu1 %v1006_v2  ;;  %v435_v5 = vld [vmem:[%s1297_s4 + $0x10] sm:$0xf]  ;;  %v868_v6 = vld [vmem:[%s1296_s3] sm:$0xff]   ;;  %v434_v8 = vld [vmem:[%s1297_s4 + $0x8] sm:$0xff]  ;;  %vm1008_vm1 = vmmov 0   ;;  %v1009_v35 = vmov 0.0  }
  0x48   : > { %401 = vperm.xlu0 %866, %v397_v3   ;;  %792 = vmatprep.mubr.msk.bf16.mxu0 %vm459_vm0, %v868_v6  ;;  %v433_v7 = vld [vmem:[%s1297_s4] sm:$0xff]  ;;  %v396_v14 = vld [vmem:[%s350_s19 + $0x8] sm:$0xff]  ;;  %vm528_vm2 = vcmask 1043456   ;;  %vm524_vm3 = vcmask 162816   ;;  %s779_s25 = sshll.u32 %s1081_s9, 7  ;;  %s609_s22 = scalar_lea.sflag [#allocation8], %s1162_s10 }
  0x49   : > { %438 = vperm.xlu1 %867, %v433_v7   ;;  %v518_v9 = vld [vmem:[%s1299_s6] sm:$0xff]  ;;  %v394_v16 = vld [vmem:[%s342_s26 + $0x8] sm:$0xff]  ;;  %v412_v18 = vmul.f32 0.5, %v396_v14  ;;  %805 = vmatprep.subr.bf16.mxu1 %v1007_v34  ;;  %s1217_s21 = scalar_lea.hbm %s1301_s8, %s779_s25  ;;  %p1309_p6 = scmp.ne.s32.totalorder %s1307_s17, 0 }
  0x4a   : > { %v395_v10 = vld [vmem:[%s350_s19] sm:$0xff]  ;;  %s1197_s19 = scalar_lea.vmem [#allocation7], %s1165_s13  ;;  %v869_v33 = vld [vmem:[%s1296_s3 + $0x8] ss:$0 sps:$4 sm:$0x33]   ;;  %802 = vmatprep.mubr.msk.f32.mxu1 %vm1008_vm1, %v1009_v35  ;;  %s1010_s20 = smov [#allocation7]  }
  0x4b   : > { %v393_v11 = vld [vmem:[%s342_s26] sm:$0xff]  ;;  %v411_v12 = vmul.f32 0.5, %v395_v10  ;;  %s634_s16 = sshll.u32 %s1197_s19, 4  ;;  %s1210_s16 = int_to_ptr.vmem [resolvable:$true] %s634_s16 }
  0x4c   : > { %406 = vperm.xlu0 %866, %v398_v4   ;;  %v517_v50 = vld [vmem:[%s1298_s5] sm:$0xff]  ;;  %s902_s12 = scalar_lea.vmem %s1210_s16, 256 }
  0x4d   : > { %443 = vperm.xlu1 %867, %v434_v8   ;;  %p903_p5 = scmp.ne.s32.totalorder %s1210_s16, %s902_s12 }
  0x4f   : > { %p904_p9 = pnand %p903_p5, %p1309_p6 }
  0x50   : > { %448 = vperm.xlu0 %866, %v435_v5  }
  0x51   : > { %521 = vperm.xlu1 %867, %v518_v9   ;;  %p905_p10 = pneg %p904_p9 }
  0xc7   : > { %v402_v13 = vpop.permute.xlu0 %401 }
  0xc8   : > { %v409_v15 = vmul.f32 %v402_v13, %v393_v11  ;;  %v439_v36 = vpop.permute.xlu1 %438 }
  0xca   : > { %v413_v17 = vadd.f32 %v411_v12, %v409_v15 }
  0xcb   : > { %v407_v19 = vpop.permute.xlu0 %406 }
  0xcc   : > { %870 = vtanh.f32 %v413_v17  ;;  %v410_v20 = vmul.f32 %v407_v19, %v394_v16  ;;  %v444_v41 = vpop.permute.xlu1 %443 }
  0xce   : > { %v414_v21 = vadd.f32 %v412_v18, %v410_v20 }
  0xcf   : > { %v449_v46 = vpop.permute.xlu0 %448 }
  0xd0   : > { %872 = vtanh.f32 %v414_v21 }
  0xd6   : > { %v871_v22 = vpop.eup %870 }
  0xd7   : > { %v417_v23 = vmul.f32 128.0, %v871_v22 }
  0xd9   : > { %v808_v24 = vround.rtne.f32 %v417_v23 }
  0xda   : > { %v873_v25 = vpop.eup %872 }
  0xdb   : > { %v418_v26 = vmul.f32 128.0, %v873_v25  ;;  %v421_v27 = vmul.f32 0.0078125, %v808_v24 }
  0xdd   : > { %v809_v28 = vround.rtne.f32 %v418_v26  ;;  %v769_v29 = vclamps-f32 %v421_v27, 1.0 }
  0xdf   : > { %v422_v30 = vmul.f32 0.0078125, %v809_v28  ;;  %427 = vst [vmem:[%s1197_s19] sm:$0xff] %v769_v29 }
  0xe1   : > { %v770_v31 = vclamps-f32 %v422_v30, 1.0 }
  0xe3   : > { %428 = vst [vmem:[%s1197_s19 + $0x8] sm:$0xff] %v770_v31  ;;  %v432_v32 = vpack.c.bf16 %v770_v31, %v769_v29  ;;  %s906_s19 = sshll.u32 %s1010_s20, 4  ;;  %s907_s19 = int_to_ptr.vmem [resolvable:$false] %s906_s19 }
  0xe4   : > { %s908_s26 = scalar_lea.vmem %s907_s19, 512  ;;  %p909_p11 = scmp.lt.s32.totalorder %s1210_s16, %s907_s19 }
  0xe5   : > { %790 = vmatprep.subr.bf16.mxu0 %v432_v32  ;;  %p910_p7 = scmp.lt.s32.totalorder %s908_s26, %s902_s12 }
  0xe6   : > { %791 = vmatpush3.bf16.msra.mxu0 %v432_v32 }
  0xe7   : > { %p911_p8 = por %p910_p7, %p909_p11 }
  0xe9   : > { %793 = vmatmul.mubr.msk.bf16.vlgmr.msra.gmra.mrb[0].mxu0 %vm459_vm0, %v869_v33  ;;  %p912_p12 = pnand %p911_p8, %p905_p10 }
 0x1bc   : > { %v794_v37 = vpop.f32.mrb[0].mxu0 }
 0x1bd   : > { %v500_v38 = vpop.f32.mrb[1].mxu0  ;;  %v509_v47 = vadd.f32 %v794_v37, %v449_v46 }
 0x1be   : > { %v501_v39 = vadd.f32 %v500_v38, %v439_v36  ;;  %v795_v40 = vpop.f32.mrb[2].mxu0 }
 0x1bf   : > { %v503_v42 = vpop.f32.mrb[3].mxu0  ;;  %v516_v49 = vmax.f32 %v509_v47, 0.0 }
 0x1c0   : > { %v504_v43 = vadd.f32 %v503_v42, %v444_v41  ;;  %v514_v44 = vmax.f32 %v501_v39, 0.0 }
 0x1c2   : > { %v515_v45 = vmax.f32 %v504_v43, 0.0 }
 0x1c4   : > { %v806_v48 = vpack.c.bf16 %v515_v45, %v514_v44 }
 0x1c6   : > { %807 = vmatpush3.bf16.msra.mxu1 %v806_v48 }
 0x1c7   : > { %800 = vmatprep.subr.mxu1 %v1009_v35 }
 0x1ca   : > { %801 = vmatpush3.msk.msra.mxu1 %vm528_vm2, %v516_v49 }
 0x1cb   : > { %803 = vmatmul.mubr.msk.f32.vlgmr.msra.gmra.mrb[0].mxu1 %vm524_vm3, %v517_v50 }
 0x1cc   : > { %915 = shalt.err (!%p912_p12)
}
 0x1cd   : > { %s916_s24 = scalar_lea.hbm %s1217_s21, 256  ;;  %s920_s14 = scalar_lea.hbm %s1301_s8, 512 }
 0x1ce   : > { %p917_p13 = scmp.ne.s32.totalorder %s1217_s21, %s916_s24  ;;  %p921_p0 = scmp.lt.u32.totalorder %s1217_s21, %s1301_s8 }
 0x1cf   : > { %p922_p3 = scmp.lt.u32.totalorder %s920_s14, %s916_s24  ;;  %p924_p5 = scmp.lt.u32.totalorder %s916_s24, %s1217_s21 }
 0x1d0   : > { %p918_p1 = pnand %p917_p13, %p1309_p6 }
 0x1d1   : > { %p923_p4 = por %p922_p3, %p921_p0 }
 0x1d2   : > { %p919_p2 = pneg %p918_p1 }
 0x1d3   : > { %p925_p9 = por %p924_p5, %p923_p4 }
 0x1d5   : > { %p926_p10 = pnand %p925_p9, %p919_p2 }
 0x1d7   : > { %929 = shalt.err (!%p926_p10)
}
 0x1d8   : > { %s1011_s12 = smov 128   ;;  %s1012_s19 = smov 256   ;;  %v522_v51 = vpop.permute.xlu1 %521 }
 0x1d9   : > { %s1013_s26 = smov 8   ;;  %s767_s13 = sshll.u32 %s1162_s10, 3 }
 0x1da   : > { %813 = dma.vmem_to_hbm [thread:$0]  (%p1309_p6), %s1210_s16, 256, %s1217_s21, %s609_s22, %s1011_s12, %s1012_s19, %s1013_s26  }
 0x1db   : > { %s384_s23 = scalar_lea.vmem [#allocation6], %s767_s13  ;;  %s1249_s20 = scalar_lea.hbm %s1300_s7, %s779_s25 }
 0x1dc   : > { %s622_s24 = sshll.u32 %s384_s23, 4  ;;  %s604_s16 = scalar_lea.sflag [#allocation5], %s1162_s10  ;;  %s1251_s24 = int_to_ptr.vmem [resolvable:$true] %s622_s24 }
 0x1dd   : > { %s930_s21 = scalar_lea.vmem %s1251_s24, 128  ;;  %s1014_s22 = smov [#allocation6]  }
 0x1de   : > { %p931_p11 = scmp.ne.s32.totalorder %s1251_s24, %s930_s21  ;;  %s934_s12 = sshll.u32 %s1014_s22, 4  ;;  %s935_s12 = int_to_ptr.vmem [resolvable:$false] %s934_s12 }
 0x1df   : > { %s936_s9 = scalar_lea.vmem %s935_s12, 256  ;;  %p937_p12 = scmp.lt.s32.totalorder %s1251_s24, %s935_s12 }
 0x1e0   : > { %p932_p7 = pnand %p931_p11, %p1309_p6  ;;  %p938_p13 = scmp.lt.s32.totalorder %s936_s9, %s930_s21 }
 0x1e2   : > { %p933_p8 = pneg %p932_p7  ;;  %p939_p1 = por %p938_p13, %p937_p12 }
 0x1e4   : > { %p940_p2 = pnand %p939_p1, %p933_p8 }
 0x29e   : > { %v598_v52 = vpop.f32.mrb[0].mxu1 }
 0x29f   : > { %v599_v53 = vadd.f32 %v598_v52, %v522_v51  ;;  %v804_v54 = vpop.f32.mrb[1].mxu1 }
 0x2a1   : > { %602 = vst [vmem:[%s384_s23] sm:$0xff] %v599_v53 }
 0x2a2   : > { %943 = shalt.err (!%p940_p2)
}
 0x2a3   : > { %s944_s10 = scalar_lea.hbm %s1249_s20, 128  ;;  %s948_s26 = scalar_lea.hbm %s1300_s7, 256 }
 0x2a4   : > { %p945_p0 = scmp.ne.s32.totalorder %s1249_s20, %s944_s10  ;;  %p949_p5 = scmp.lt.u32.totalorder %s1249_s20, %s1300_s7 }
 0x2a5   : > { %p950_p9 = scmp.lt.u32.totalorder %s948_s26, %s944_s10  ;;  %p952_p11 = scmp.lt.u32.totalorder %s944_s10, %s1249_s20 }
 0x2a6   : > { %p946_p3 = pnand %p945_p0, %p1309_p6 }
 0x2a7   : > { %p951_p10 = por %p950_p9, %p949_p5 }
 0x2a8   : > { %p947_p4 = pneg %p946_p3 }
 0x2a9   : > { %p953_p7 = por %p952_p11, %p951_p10 }
 0x2ab   : > { %p954_p8 = pnand %p953_p7, %p947_p4 }
 0x2ad   : > { %957 = shalt.err (!%p954_p8)
}
 0x2ae   : > { %812 = dma.vmem_to_hbm [thread:$0]  (%p1309_p6), %s1251_s24, 128, %s1249_s20, %s604_s16  }
 0x2af PF: > { %s649_s14 = sand.u32 1, %s988_s27   ;;  %p1310_p12 = scmp.ne.s32.totalorder %s1308_s18, 0 }
 0x2b0   : > { %p1311_p13 = scmp.ge.s32.totalorder %s1000_s30, 2  ;;  %s650_s15 = scalar_lea.sflag [#allocation5], %s649_s14 }
 0x2b2   : > { %p817_p1 = pnand %p1311_p13, %p1310_p12 }
 0x2b4   : > { %979 = dma.done.wait (!%p817_p1), %s650_s15, 128  }
 0x2b5   : > { %981 = vsyncadd (!%p817_p1), %s650_s15, 4294967168  ;;  %s659_s21 = scalar_lea.sflag [#allocation8], %s649_s14 }
 0x2b6   : > { %983 = dma.done.wait (!%p817_p1), %s659_s21, 256  }
 0x2b7   : > { %985 = vsyncadd (!%p817_p1), %s659_s21, 4294967040  ;;  %s1312_s17 = sld [smem:[#allocation12_spill]]  ;;  %p25_p6 = scmp.ge.s32.totalorder %s1085_s11, 4  }
 0x2b8   : > { %s1313_s27 = smov %s992_s28  ;;  %s1314_s28 = smov %s996_s29 }
 0x2b9   : > { %s1316_s30 = smov %s1085_s11  ;;  %27 = sbr.rel (!%p25_p6) target bundleno = 7 (0x7), region = 156 }
 0x2bd   : > { %s1315_s29 = smov %s1312_s17 }
 0x2c0   :  { %664 = vsyncpa [#allocation4], 1 }
 0x2c1   :  { %666 = vsyncpa [#allocation4 + $0x1], 1 }
 0x2c2   :  { %667 = vsyncpa [#allocation5], 1 }
 0x2c3   :  { %669 = vsyncpa [#allocation5 + $0x1], 1 }
 0x2c4   :  { %670 = vsyncpa [#allocation8], 1 }
 0x2c5   :  { %672 = vsyncpa [#allocation8 + $0x1], 1 }

</bundles_post_ra>
